<compile_context>
chip_gen: v5e
topology: v5e:2x2
jax: 0.10.0
libtpu: 0.0.40
codegen_flags: <defaults>
</compile_context>

<pallas_src>
import math

import jax
import jax.numpy as jnp
from jax.experimental import pallas as pl
from jax.experimental.pallas import tpu as pltpu


def _cosine_embed_kernel(taus_ref, ipi_ref, w_ref, b_ref, o_ref):
    """One M-tile of ReLU(cos(taus * i_pi) @ W + b).

    taus_ref: (tile_m, 1)   f32  -- quantile fractions for this row tile (streamed)
    ipi_ref : (1, C)        f32  -- pi * [1..C]              (resident)
    w_ref   : (C, E_pad)         -- Linear weight (in, out)  (resident)
    b_ref   : (1, E_pad)    f32  -- Linear bias              (resident)
    o_ref   : (tile_m, E_pad)    -- lane-dense output tile
    """
    # cos argument + cos evaluated in f32 (bf16 rounding of pi*C*tau hurts,
    # and v5e has no bf16 EUP path anyway).
    arg = taus_ref[...].astype(jnp.float32) * ipi_ref[...]          # (tile_m, C)
    cosines = jnp.cos(arg)                                           # EUP
    # Feed the MXU in the weight's dtype (bf16 weight -> bf16 MXU inputs);
    # accumulate in f32.
    z = jnp.dot(cosines.astype(w_ref.dtype), w_ref[...],
                preferred_element_type=jnp.float32)                  # (tile_m, E_pad)
    z = z + b_ref[...]
    o_ref[...] = jnp.maximum(z, 0.0).astype(o_ref.dtype)


def _round_up(x, m):
    return ((x + m - 1) // m) * m


def _reference(taus, weight, bias, num_cosines, embedding_dim):
    """Fused pure-JAX forward (reference; also the tiny-shape fast path)."""
    B, N = taus.shape
    i_pi = jnp.pi * jnp.arange(1, num_cosines + 1, dtype=jnp.float32
                               ).reshape(1, 1, num_cosines)
    cosines = jnp.cos(taus[:, :, None].astype(jnp.float32) * i_pi
                      ).reshape(B * N, num_cosines)
    z = cosines @ weight.astype(jnp.float32) + bias.astype(jnp.float32
                                                           ).reshape(1, embedding_dim)
    return jnp.maximum(z, 0.0).astype(taus.dtype).reshape(B, N, embedding_dim)


def cosine_embedding_net(taus, weight, bias, *, num_cosines, embedding_dim,
                         tile_m=1024, use_pallas=None):
    """taus: (B, N). weight: (num_cosines, embedding_dim). bias: (embedding_dim,)."""
    B, N = taus.shape
    M = B * N
    out_dtype = taus.dtype

    if use_pallas is None:
        # Pallas launch overhead dwarfs the work for tiny problems; let XLA fuse.
        use_pallas = (M >= 1024 and M * max(embedding_dim, num_cosines) >= 1024 * 128)
    if not use_pallas:
        return _reference(taus, weight, bias, num_cosines, embedding_dim)

    # ---- pad to TPU-friendly shapes ---------------------------------------
    E_pad = _round_up(embedding_dim, 128)            # lane-dense output stores

    # Clamp tile_m so 2x double-buffered (tile_m, E_pad) f32 output tiles stay
    # under ~8 MiB each direction -> safe even on v7x's 64 MiB physical VMEM.
    budget_rows = max(8, (((8 << 20) // (E_pad * 4)) // 8) * 8)
    tile_m = max(8, _round_up(min(tile_m, budget_rows, M), 8))
    M_pad = _round_up(M, tile_m)

    taus_flat = jnp.zeros((M_pad, 1), jnp.float32).at[:M, 0].set(
        taus.reshape(M).astype(jnp.float32))
    i_pi = (jnp.pi * jnp.arange(1, num_cosines + 1, dtype=jnp.float32)
            ).reshape(1, num_cosines)
    w_pad = jnp.zeros((num_cosines, E_pad), weight.dtype
                      ).at[:, :embedding_dim].set(weight)
    b_pad = jnp.zeros((1, E_pad), jnp.float32
                      ).at[0, :embedding_dim].set(bias.astype(jnp.float32))

    grid = (M_pad // tile_m,)
    out = pl.pallas_call(
        _cosine_embed_kernel,
        out_shape=jax.ShapeDtypeStruct((M_pad, E_pad), out_dtype),
        grid=grid,
        in_specs=[
            pl.BlockSpec((tile_m, 1), lambda i: (i, 0)),            # taus: streamed
            pl.BlockSpec((1, num_cosines), lambda i: (0, 0)),       # i_pi: resident
            pl.BlockSpec((num_cosines, E_pad), lambda i: (0, 0)),   # W:    resident
            pl.BlockSpec((1, E_pad), lambda i: (0, 0)),             # b:    resident
        ],
        out_specs=pl.BlockSpec((tile_m, E_pad), lambda i: (i, 0)),
        compiler_params=pltpu.CompilerParams(
            dimension_semantics=("parallel",),   # rows independent -> v7x 2 TCs
            vmem_limit_bytes=64 << 20,
        ),
    )(taus_flat, i_pi, w_pad, b_pad)

    return out[:M, :embedding_dim].reshape(B, N, embedding_dim)


if __name__ == "__main__":
    num_cosines = 4     # module default
    embedding_dim = 1   # module default
    B, N = 2, 8         # taus: (batch=2, N=8 quantile fractions)

    key = jax.random.PRNGKey(0)
    k_tau, k_w, k_b = jax.random.split(key, 3)

    # taus in [0, 1) like IQN quantile fractions.
    taus = jax.random.uniform(k_tau, (B, N), dtype=jnp.float32)

    # Deterministic Linear params, stored as (in_features, out_features).
    bound = 1.0 / math.sqrt(float(num_cosines))
    weight = jax.random.uniform(k_w, (num_cosines, embedding_dim),
                                dtype=jnp.float32, minval=-bound, maxval=bound)
    bias = jax.random.uniform(k_b, (embedding_dim,),
                              dtype=jnp.float32, minval=-bound, maxval=bound)

    ref = _reference(taus, weight, bias, num_cosines, embedding_dim)

    # 1) Force the Pallas path at the module-default tiny config.
    out = cosine_embedding_net(taus, weight, bias,
                               num_cosines=num_cosines,
                               embedding_dim=embedding_dim,
                               use_pallas=True)
    out = jax.block_until_ready(out)
    assert out.shape == (B, N, embedding_dim), out.shape
    assert jnp.allclose(out, ref, atol=1e-5, rtol=1e-5), "pallas mismatch vs reference"

    # 2) Exercise a multi-step M grid (several tiles) at a still-small shape.
    B2, N2 = 2, 64      # M = 128 rows; tile_m=32 -> grid=(4,)
    taus2 = jax.random.uniform(jax.random.PRNGKey(1), (B2, N2), dtype=jnp.float32)
    out2 = cosine_embedding_net(taus2, weight, bias,
                                num_cosines=num_cosines,
                                embedding_dim=embedding_dim,
                                tile_m=32, use_pallas=True)
    out2 = jax.block_until_ready(out2)
    ref2 = _reference(taus2, weight, bias, num_cosines, embedding_dim)
    assert jnp.allclose(out2, ref2, atol=1e-5, rtol=1e-5), "tiled pallas mismatch"

    # 3) Auto-dispatch: tiny default config routes to the fused XLA path.
    out3 = cosine_embedding_net(taus, weight, bias,
                                num_cosines=num_cosines,
                                embedding_dim=embedding_dim)
    out3 = jax.block_until_ready(out3)
    assert jnp.allclose(out3, ref, atol=1e-5, rtol=1e-5), "auto-dispatch mismatch"

    print("KERNEL_OK")
</pallas_src>

<mosaic_0001>
module attributes {stable_mosaic.version = 11 : i64} {
  func.func @_cosine_embed_kernel(%arg0: i32, %arg1: memref<16x1xf32, #tpu.memory_space<vmem>>, %arg2: memref<1x4xf32, #tpu.memory_space<vmem>>, %arg3: memref<4x128xf32, #tpu.memory_space<vmem>>, %arg4: memref<1x128xf32, #tpu.memory_space<vmem>>, %arg5: memref<16x128xf32, #tpu.memory_space<vmem>>) attributes {dimension_semantics = [#tpu.dimension_semantics<parallel>], iteration_bounds = array<i64: 1>, scalar_prefetch = 0 : i64, scratch_operands = 0 : i64, tpu.core_type = #tpu.core_type<tc>, window_params = [{transform_indices = @transform_0, window_bounds = array<i64: 16, 1>}, {pipeline_mode = #tpu.pipeline_mode<synchronous>, transform_indices = @transform_1, window_bounds = array<i64: 1, 4>}, {pipeline_mode = #tpu.pipeline_mode<synchronous>, transform_indices = @transform_2, window_bounds = array<i64: 4, 128>}, {pipeline_mode = #tpu.pipeline_mode<synchronous>, transform_indices = @transform_3, window_bounds = array<i64: 1, 128>}, {transform_indices = @transform_4, window_bounds = array<i64: 16, 128>}]} {
    %c0 = arith.constant 0 : index
    %c0_0 = arith.constant 0 : index
    %0 = vector.load %arg1[%c0, %c0_0] : memref<16x1xf32, #tpu.memory_space<vmem>>, vector<16x1xf32>
    %c0_1 = arith.constant 0 : index
    %c0_2 = arith.constant 0 : index
    %1 = vector.load %arg2[%c0_1, %c0_2] : memref<1x4xf32, #tpu.memory_space<vmem>>, vector<1x4xf32>
    %2 = vector.broadcast %0 : vector<16x1xf32> to vector<16x4xf32>
    %3 = vector.broadcast %1 : vector<1x4xf32> to vector<16x4xf32>
    %4 = arith.mulf %2, %3 : vector<16x4xf32>
    %5 = math.cos %4 : vector<16x4xf32>
    %c0_3 = arith.constant 0 : index
    %c0_4 = arith.constant 0 : index
    %6 = vector.load %arg3[%c0_3, %c0_4] : memref<4x128xf32, #tpu.memory_space<vmem>>, vector<4x128xf32>
    %cst = arith.constant dense<0.000000e+00> : vector<16x128xf32>
    %7 = tpu.matmul %5, %6, %cst {dimension_numbers = #tpu.dot_dimension_numbers<[1], [0], [0], [1], [0, 0, 1, 1], [], []>} : vector<16x4xf32>, vector<4x128xf32>, vector<16x128xf32> -> vector<16x128xf32>
    %c0_5 = arith.constant 0 : index
    %c0_6 = arith.constant 0 : index
    %8 = vector.load %arg4[%c0_5, %c0_6] : memref<1x128xf32, #tpu.memory_space<vmem>>, vector<1x128xf32>
    %9 = vector.broadcast %8 : vector<1x128xf32> to vector<16x128xf32>
    %10 = arith.addf %7, %9 : vector<16x128xf32>
    %cst_7 = arith.constant 0.000000e+00 : f32
    %11 = vector.broadcast %cst_7 : f32 to vector<16x128xf32>
    %12 = arith.maximumf %10, %11 : vector<16x128xf32>
    %c0_8 = arith.constant 0 : index
    %c0_9 = arith.constant 0 : index
    %13 = vector.load %arg5[%c0_8, %c0_9] : memref<16x128xf32, #tpu.memory_space<vmem>>, vector<16x128xf32>
    tpu.vector_store %arg5[%c0_8, %c0_9], %12 {strides = array<i32>} : memref<16x128xf32, #tpu.memory_space<vmem>>, vector<16x128xf32>,
    return
  }
  func.func @transform_0(%arg0: i32) -> (i32, i32) {
    %c0_i32 = arith.constant 0 : i32
    %c0_i32_0 = arith.constant 0 : i32
    return %arg0, %c0_i32 : i32, i32
  }
  func.func @transform_1(%arg0: i32) -> (i32, i32) {
    %c0_i32 = arith.constant 0 : i32
    %c0_i32_0 = arith.constant 0 : i32
    %c0_i32_1 = arith.constant 0 : i32
    return %c0_i32, %c0_i32_0 : i32, i32
  }
  func.func @transform_2(%arg0: i32) -> (i32, i32) {
    %c0_i32 = arith.constant 0 : i32
    %c0_i32_0 = arith.constant 0 : i32
    %c0_i32_1 = arith.constant 0 : i32
    return %c0_i32, %c0_i32_0 : i32, i32
  }
  func.func @transform_3(%arg0: i32) -> (i32, i32) {
    %c0_i32 = arith.constant 0 : i32
    %c0_i32_0 = arith.constant 0 : i32
    %c0_i32_1 = arith.constant 0 : i32
    return %c0_i32, %c0_i32_0 : i32, i32
  }
  func.func @transform_4(%arg0: i32) -> (i32, i32) {
    %c0_i32 = arith.constant 0 : i32
    %c0_i32_0 = arith.constant 0 : i32
    return %arg0, %c0_i32 : i32, i32
  }
}

</mosaic_0001>

<bundles_post_ra>
// kernel: tpu_custom_call.1
= control target key start
LH: loop header
LB: loop body
LE: loop exit
PB: predicated region body
PF: predicated region fallthrough
CT: control target
= control target key end

     0   :  { %v454_v1 = vmov 0   ;;  %s687_s0 = inlined_call_operand.vmem [shape: f32[16,1], index: 0, kind: input, shape index: {}]   ;;  %s688_s1 = inlined_call_operand.vmem [shape: f32[1,4], index: 1, kind: input, shape index: {}]   ;;  %s689_s2 = inlined_call_operand.vmem [shape: f32[4,128], index: 2, kind: input, shape index: {}]   ;;  %s690_s3 = inlined_call_operand.vmem [shape: f32[1,128], index: 3, kind: input, shape index: {}]   ;;  %s691_s4 = inlined_call_operand.hbm [shape: f32[16,128], index: 4, kind: output, shape index: {}]  }
   0x1   :  { %v18_v0 = vld [vmem:[%s687_s0] sm:$0xff]  ;;  %425 = vset.pattern.permute.xlu0 %v454_v1 }
   0x2   :  { %23 = vperm.xlu0 %425, %v18_v0  }
   0x3   :  { %9 = vsyncpa [#allocation3], 0  ;;  %v19_v2 = vld [vmem:[%s687_s0 + $0x8] sm:$0xff]  ;;  %v426_v3 = vld [vmem:[%s688_s1] ss:$0 sm:$0xff]  ;;  %vm356_vm0 = vcmask 1043456  }
   0x4   :  { %v344_v4 = vld [vmem:[%s689_s2] sm:$0xf]  ;;  %v455_v25 = vmov 2102212464   ;;  %v456_v27 = vmov 920167782  }
   0x5   :  { %411 = vmatpush.msk.msra.mxu0 %vm356_vm0, %v344_v4  ;;  %414 = vmatpush.msk.msra.mxu1 %vm356_vm0, %v344_v4  ;;  %v457_v30 = vmov 683565275   ;;  %v458_v33 = vmov 1326507024   ;;  %v459_v35 = vmov 2475754826  }
   0x6   :  { %v460_v39 = vmov 2131351028   ;;  %s461_s2 = smov [#allocation2]   ;;  %s393_s26 = sshll.u32 %s691_s4, 4  ;;  %s394_s26 = int_to_ptr.hbm [resolvable:$true] %s393_s26 }
   0x7   :  { %s391_s23 = sshll.u32 %s461_s2, 4  ;;  %s462_s27 = smov 128   ;;  %s392_s23 = int_to_ptr.vmem [resolvable:$true] %s391_s23 }
   0x8   :  { %s463_s28 = smov 8  }
   0xa   :  { %28 = vperm.xlu0 %425, %v19_v2  }
  0x74   :  { %v24_v5 = vpop.permute.xlu0 %23 }
  0x75   :  { %v502_v6 = vmul.f32 %v426_v3, %v24_v5 }
  0x77   :  { %v39_v7 = vand.u32 2139095040, %v502_v6  ;;  %v36_v8 = vand.u32 2147483647, %v502_v6 }
  0x79   :  { %v40_v9 = vshrl.u32 %v39_v7, 23  ;;  %v43_v10 = vand.u32 8388607, %v36_v8 }
  0x7b   :  { %v405_v11 = vadd.s32 4294967169, %v40_v9  ;;  %v44_v12 = vor.u32 8388608, %v43_v10 }
  0x7c   :  { %v29_v13 = vpop.permute.xlu0 %28 }
  0x7d   :  { %v46_v14 = vadd.s32 1, %v405_v11  ;;  %v508_v15 = vmul.f32 %v426_v3, %v29_v13  ;;  %v511_v17 = vshll.u32 %v44_v12, 8 }
  0x7f   :  { %vm47_vm1 = vcmp.gt.s32.totalorder %v46_v14, 0  ;;  %v193_v16 = vand.u32 2139095040, %v508_v15  ;;  %v516_v23 = vand.u32 65535, %v511_v17  ;;  %v190_v24 = vand.u32 2147483647, %v508_v15 }
  0x80   :  { %v48_v18 = vsel %vm47_vm1, %v46_v14, 0  ;;  %v86_v9 = vshrl.u32 %v511_v17, 16 }
  0x81   :  { %v50_v19 = vand.u32 31, %v48_v18  ;;  %v194_v20 = vshrl.u32 %v193_v16, 23  ;;  %v513_v21 = vshrl.u32 %v48_v18, 5  ;;  %v534_v58 = vand.u32 8388607, %v190_v24 }
  0x83   :  { %v51_v22 = vsub.s32 32, %v50_v19  ;;  %v62_v26 = vshll.u32 %v455_v25, %v50_v19  ;;  %v65_v28 = vshll.u32 %v456_v27, %v50_v19  ;;  %v408_v29 = vadd.s32 4294967169, %v194_v20 }
  0x84   :  { %v53_v31 = vshll.u32 %v457_v30, %v50_v19  ;;  %v56_v37 = vshll.u32 %v459_v35, %v50_v19  ;;  %v59_v41 = vshll.u32 %v460_v39, %v50_v19  ;;  %vm71_vm2 = vcmp.lt.s32.totalorder %v513_v21, 4 }
  0x85   :  { %v63_v32 = vshrl.u32 %v456_v27, %v51_v22  ;;  %v66_v34 = vshrl.u32 %v458_v33, %v51_v22  ;;  %v54_v36 = vshrl.u32 %v459_v35, %v51_v22  ;;  %v200_v38 = vadd.s32 1, %v408_v29 }
  0x86   :  { %v57_v40 = vshrl.u32 %v460_v39, %v51_v22  ;;  %v60_v42 = vshrl.u32 %v455_v25, %v51_v22  ;;  %v52_v46 = vshrl.u32 %v457_v30, %v51_v22  ;;  %vm68_vm4 = vcmp.lt.s32.totalorder %v513_v21, 1 }
  0x87   :  { %v64_v43 = vor.u32 %v63_v32, %v62_v26  ;;  %v67_v44 = vor.u32 %v66_v34, %v65_v28  ;;  %v55_v45 = vor.u32 %v54_v36, %v53_v31  ;;  %vm201_vm3 = vcmp.gt.s32.totalorder %v200_v38, 0 }
  0x88   :  { %v58_v47 = vor.u32 %v57_v40, %v56_v37  ;;  %v61_v48 = vor.u32 %v60_v42, %v59_v41  ;;  %v202_v51 = vsel %vm201_vm3, %v200_v38, 0  ;;  %vm70_vm5 = vcmp.lt.s32.totalorder %v513_v21, 3 }
  0x89   :  { %v77_v49 = vsel %vm71_vm2, %v64_v43, 920167782  ;;  %v81_v50 = vsel %vm71_vm2, %v67_v44, 1326507024  ;;  %v529_v52 = vand.u32 31, %v202_v51  ;;  %v536_v59 = vshrl.u32 %v202_v51, 5 }
  0x8a   :  { %v73_v53 = vsel %vm71_vm2, %v61_v48, 2102212464  ;;  %v76_v54 = vsel %vm68_vm4, %v55_v45, %v58_v47  ;;  %v78_v55 = vsel %vm70_vm5, %v61_v48, %v77_v49  ;;  %v80_v56 = vsel %vm68_vm4, %v58_v47, %v61_v48 }
  0x8b   :  { %v82_v57 = vsel %vm70_vm5, %v64_v43, %v81_v50  ;;  %v539_v60 = vsub.s32 32, %v529_v52  ;;  %vm69_vm6 = vcmp.lt.s32.totalorder %v513_v21, 2  ;;  %v72_v61 = vsel %vm68_vm4, %v52_v46, %v55_v45 }
  0x8c   :  { %v219_v62 = vshll.u32 %v456_v27, %v529_v52  ;;  %v74_v63 = vsel %vm70_vm5, %v58_v47, %v73_v53  ;;  %v79_v0 = vsel %vm69_vm6, %v76_v54, %v78_v55  ;;  %v83_v2 = vsel %vm69_vm6, %v80_v56, %v82_v57 }
  0x8d   :  { %v217_v3 = vshrl.u32 %v456_v27, %v539_v60  ;;  %v220_v4 = vshrl.u32 %v458_v33, %v539_v60  ;;  %v87_v5 = vand.u32 65535, %v83_v2  ;;  %v88_v7 = vshrl.u32 %v83_v2, 16 }
  0x8e   :  { %v109_v10 = vand.u32 65535, %v79_v0  ;;  %v110_v11 = vshrl.u32 %v79_v0, 16  ;;  %v216_v12 = vshll.u32 %v455_v25, %v529_v52  ;;  %vm225_vm7 = vcmp.lt.s32.totalorder %v536_v59, 4 }
  0x8f   :  { %v221_v13 = vor.u32 %v220_v4, %v219_v62  ;;  %v90_v14 = vmul.u32 %v88_v7, %v516_v23  ;;  %v556_v16 = vsel %vm69_vm6, %v72_v61, %v74_v63  ;;  %v91_v18 = vmul.u32 %v87_v5, %v86_v9 }
  0x90   :  { %v112_v19 = vmul.u32 %v110_v11, %v516_v23  ;;  %v198_v20 = vor.u32 8388608, %v534_v58  ;;  %v218_v22 = vor.u32 %v217_v3, %v216_v12  ;;  %v89_v26 = vmul.u32 %v87_v5, %v516_v23 }
  0x91   :  { %v92_v27 = vmul.u32 %v88_v7, %v86_v9  ;;  %v93_v28 = vshll.u32 %v90_v14, 16  ;;  %v235_v29 = vsel %vm225_vm7, %v221_v13, 1326507024  ;;  %v94_v31 = vshrl.u32 %v90_v14, 16 }
  0x92   :  { %v111_v32 = vmul.u32 %v109_v10, %v516_v23  ;;  %v113_v33 = vmul.u32 %v109_v10, %v86_v9  ;;  %v95_v21 = vshll.u32 %v91_v18, 16  ;;  %v115_v36 = vshll.u32 %v112_v19, 16 }
  0x93   :  { %vm97_vm8 = vc.u32 %v89_v26, %v93_v28  ;;  %v99_v34 = vadd.s32 %v93_v28, %v89_v26  ;;  %v96_v37 = vshrl.u32 %v91_v18, 16  ;;  %v114_v40 = vmul.u32 %v110_v11, %v86_v9 }
  0x94   :  { %v98_v38 = vsel %vm97_vm8, 1, %v454_v1  ;;  %v117_v41 = vshll.u32 %v113_v33, 16  ;;  %vm119_vm10 = vc.u32 %v111_v32, %v115_v36  ;;  %v121_v43 = vadd.s32 %v115_v36, %v111_v32 }
  0x95   :  { %v100_v42 = vadd.s32 %v98_v38, %v92_v27  ;;  %vm101_vm9 = vc.u32 %v99_v34, %v95_v21  ;;  %v120_v45 = vsel %vm119_vm10, 1, %v454_v1  ;;  %v207_v23 = vshll.u32 %v457_v30, %v529_v52 }
  0x96   :  { %v102_v44 = vsel %vm101_vm9, 1, %v454_v1  ;;  %v208_v46 = vshrl.u32 %v459_v35, %v539_v60  ;;  %v116_v48 = vshrl.u32 %v112_v19, 16  ;;  %v122_v49 = vadd.s32 %v120_v45, %v114_v40 }
  0x97   :  { %v104_v47 = vadd.s32 %v102_v44, %v100_v42  ;;  %vm123_vm11 = vc.u32 %v121_v43, %v117_v41  ;;  %v210_v53 = vshll.u32 %v459_v35, %v529_v52  ;;  %v211_v54 = vshrl.u32 %v460_v39, %v539_v60 }
  0x98   :  { %v124_v50 = vsel %vm123_vm11, 1, %v454_v1  ;;  %v572_v51 = vor.u32 %v208_v46, %v207_v23  ;;  %v213_v57 = vshll.u32 %v460_v39, %v529_v52  ;;  %v214_v58 = vshrl.u32 %v455_v25, %v539_v60 }
  0x99   :  { %v105_v55 = vadd.s32 %v104_v47, %v94_v31  ;;  %v126_v56 = vadd.s32 %v124_v50, %v122_v49  ;;  %v231_v61 = vsel %vm225_vm7, %v218_v22, 920167782  ;;  %v118_v62 = vshrl.u32 %v113_v33, 16 }
  0x9a   :  { %v584_v63 = vor.u32 %v211_v54, %v210_v53  ;;  %vm222_vm12 = vcmp.lt.s32.totalorder %v536_v59, 1  ;;  %v215_v2 = vor.u32 %v214_v58, %v213_v57  ;;  %vm224_vm13 = vcmp.lt.s32.totalorder %v536_v59, 3 }
  0x9b   :  { %v587_v35 = vadd.s32 %v105_v55, %v96_v37  ;;  %v127_v0 = vadd.s32 %v126_v56, %v116_v48  ;;  %v590_v3 = vadd.s32 %v121_v43, %v117_v41  ;;  %v236_v39 = vsel %vm224_vm13, %v218_v22, %v235_v29 }
  0x9c   :  { %v230_v25 = vsel %vm222_vm12, %v572_v51, %v584_v63  ;;  %v598_v52 = vshll.u32 %v198_v20, 8  ;;  %v129_v5 = vmul.u32 %v511_v17, %v556_v16  ;;  %vm223_vm15 = vcmp.lt.s32.totalorder %v536_v59, 2 }
  0x9d   :  { %v128_v4 = vadd.s32 %v127_v0, %v118_v62  ;;  %vm131_vm14 = vc.u32 %v587_v35, %v590_v3  ;;  %v232_v7 = vsel %vm224_vm13, %v215_v2, %v231_v61  ;;  %v234_v9 = vsel %vm222_vm12, %v584_v63, %v215_v2 }
  0x9e   :  { %v233_v11 = vsel %vm223_vm15, %v230_v25, %v232_v7  ;;  %v237_v12 = vsel %vm223_vm15, %v234_v9, %v236_v39  ;;  %v239_v17 = vand.u32 65535, %v598_v52  ;;  %v240_v13 = vshrl.u32 %v598_v52, 16 }
  0x9f   :  { %v132_v10 = vadd.s32 1, %v128_v4  ;;  %v241_v14 = vand.u32 65535, %v237_v12  ;;  %v242_v16 = vshrl.u32 %v237_v12, 16  ;;  %v263_v18 = vand.u32 65535, %v233_v11 }
  0xa0   :  { %v264_v20 = vshrl.u32 %v233_v11, 16  ;;  %v227_v54 = vsel %vm225_vm7, %v215_v2, 2102212464  ;;  %v206_v57 = vshrl.u32 %v457_v30, %v539_v60  ;;  %vm38_vm8 = vcmp.lt.s32.totalorder %v502_v6, 0 }
  0xa1   :  { %v133_v19 = vsel %vm131_vm14, %v132_v10, %v128_v4  ;;  %v244_v26 = vmul.u32 %v242_v16, %v239_v17  ;;  %v245_v27 = vmul.u32 %v241_v14, %v240_v13  ;;  %v267_v29 = vmul.u32 %v263_v18, %v240_v13 }
  0xa2   :  { %v134_v22 = vadd.s32 %v133_v19, %v129_v5  ;;  %v266_v28 = vmul.u32 %v264_v20, %v239_v17  ;;  %v243_v32 = vmul.u32 %v241_v14, %v239_v17  ;;  %v246_v21 = vmul.u32 %v242_v16, %v240_v13 }
  0xa3   :  { %v247_v33 = vshll.u32 %v244_v26, 16  ;;  %v265_v34 = vmul.u32 %v263_v18, %v239_v17  ;;  %v249_v38 = vshll.u32 %v245_v27, 16  ;;  %v271_v42 = vshll.u32 %v267_v29, 16 }
  0xa4   :  { %v135_v31 = vadd.s32 536870912, %v134_v22  ;;  %v269_v36 = vshll.u32 %v266_v28, 16  ;;  %v268_v23 = vmul.u32 %v264_v20, %v240_v13  ;;  %v248_v49 = vshrl.u32 %v244_v26, 16 }
  0xa5   :  { %vm251_vm0 = vc.u32 %v243_v32, %v247_v33  ;;  %v253_v40 = vadd.s32 %v247_v33, %v243_v32  ;;  %v250_v61 = vshrl.u32 %v245_v27, 16  ;;  %v270_v62 = vshrl.u32 %v266_v28, 16 }
  0xa6   :  { %v616_v37 = vshrl.u32 %v135_v31, 30  ;;  %v252_v41 = vsel %vm251_vm0, 1, %v454_v1  ;;  %vm273_vm1 = vc.u32 %v265_v34, %v269_v36  ;;  %v275_v43 = vadd.s32 %v269_v36, %v265_v34 }
  0xa7   :  { %v254_v45 = vadd.s32 %v252_v41, %v246_v21  ;;  %vm255_vm2 = vc.u32 %v253_v40, %v249_v38  ;;  %v274_v47 = vsel %vm273_vm1, 1, %v454_v1  ;;  %v226_v39 = vsel %vm222_vm12, %v206_v57, %v572_v51 }
  0xa8   :  { %v137_v44 = vshll.u32 %v616_v37, 30  ;;  %v256_v46 = vsel %vm255_vm2, 1, %v454_v1  ;;  %vm277_vm3 = vc.u32 %v275_v43, %v271_v42  ;;  %v276_v53 = vadd.s32 %v274_v47, %v268_v23 }
  0xa9   :  { %v258_v50 = vadd.s32 %v256_v46, %v254_v45  ;;  %v278_v55 = vsel %vm277_vm3, 1, %v454_v1  ;;  %v228_v2 = vsel %vm224_vm13, %v584_v63, %v227_v54  ;;  %v272_v5 = vshrl.u32 %v267_v29, 16 }
  0xaa   :  { %v138_v48 = vsub.s32 %v134_v22, %v137_v44  ;;  %v280_v0 = vadd.s32 %v278_v55, %v276_v53  ;;  %v279_v9 = vadd.s32 %v275_v43, %v271_v42  ;;  %v229_v30 = vsel %vm223_vm15, %v226_v39, %v228_v2 }
  0xab   :  { %v259_v58 = vadd.s32 %v258_v50, %v248_v49  ;;  %v283_v51 = vmul.u32 %v598_v52, %v229_v30  ;;  %v130_v17 = vadd.s32 %v590_v3, %v587_v35  ;;  %vm644_vm9 = vcmp.le.f32.partialorder %v36_v8, 0.7853982 }
  0xac   :  { %vm139_vm4 = vcmp.lt.s32.totalorder %v138_v48, 0  ;;  %v140_v56 = vsub.s32 0, %v138_v48  ;;  %v281_v7 = vadd.s32 %v280_v0, %v270_v62  ;;  %v160_v45 = vsub.s32 4, %v616_v37 }
  0xad   :  { %v260_v1 = vadd.s32 %v259_v58, %v250_v61  ;;  %vm192_vm13 = vcmp.lt.s32.totalorder %v508_v15, 0  ;;  %vm349_vm15 = vcmask 31744   ;;  %vm179_vm0 = vweird.f32 %v502_v6 }
  0xae   :  { %v141_v25 = vsel %vm139_vm4, %v140_v56, %v138_v48  ;;  %v282_v60 = vadd.s32 %v281_v7, %v272_v5  ;;  %v161_v55 = vsel %vm38_vm8, %v160_v45, %v616_v37  ;;  %vm663_vm1 = vcmp.le.f32.partialorder %v190_v24, 0.7853982 }
  0xaf   :  { %v142_v4 = vclz %v141_v25  ;;  %vm285_vm5 = vc.u32 %v260_v1, %v279_v9  ;;  %v284_v47 = vadd.s32 %v279_v9, %v260_v1  ;;  %v163_v25 = vsel %vm644_vm9, 0, %v161_v55 }
  0xb0   :  { %v286_v11 = vadd.s32 1, %v282_v60  ;;  %v180_v7 = vand.u32 3, %v163_v25 }
  0xb1   :  { %v406_v10 = vadd.s32 4294967294, %v142_v4 }
  0xb2   :  { %v287_v14 = vsel %vm285_vm5, %v286_v11, %v282_v60  ;;  %vm182_vm11 = vcmp.eq.s32.totalorder %v180_v7, 0  ;;  %vm185_vm12 = vcmp.eq.s32.totalorder %v180_v7, 2  ;;  %vm181_vm14 = vcmp.lt.s32.totalorder %v180_v7, 2 }
  0xb3   :  { %vm407_vm6 = vcmp.lt.s32.totalorder %v406_v10, 0  ;;  %v288_v16 = vadd.s32 %v287_v14, %v283_v51  ;;  %vm333_vm5 = vweird.f32 %v508_v15 }
  0xb4   :  { %v145_v12 = vsel %vm407_vm6, 0, %v406_v10 }
  0xb5   :  { %v146_v63 = vsub.s32 32, %v145_v12  ;;  %v150_v13 = vsub.s32 4294967266, %v145_v12  ;;  %v147_v18 = vshll.u32 %v138_v48, %v145_v12  ;;  %v289_v22 = vadd.s32 536870912, %v288_v16 }
  0xb7   :  { %v148_v19 = vshrl.u32 %v130_v17, %v146_v63  ;;  %v151_v20 = vadd.s32 127, %v150_v13  ;;  %v638_v27 = vshrl.u32 %v289_v22, 30 }
  0xb9   :  { %v149_v59 = vor.u32 %v148_v19, %v147_v18  ;;  %v152_v26 = vshll.u32 %v151_v20, 23  ;;  %v291_v29 = vshll.u32 %v638_v27, 30  ;;  %v314_v22 = vsub.s32 4, %v638_v27 }
  0xbb   :  { %v153_v28 = vor.u32 4788187, %v152_v26  ;;  %v156_v52 = vcvt.s32.f32 %v149_v59  ;;  %v292_v32 = vsub.s32 %v288_v16, %v291_v29  ;;  %v315_v29 = vsel %vm192_vm13, %v314_v22, %v638_v27 }
  0xbd   :  { %v154_v31 = vand.u32 2147483647, %v153_v28  ;;  %vm293_vm7 = vcmp.lt.s32.totalorder %v292_v32, 0  ;;  %v294_v35 = vsub.s32 0, %v292_v32 }
  0xbf   :  { %v157_v33 = vmul.f32 %v156_v52, %v154_v31  ;;  %v295_v21 = vsel %vm293_vm7, %v294_v35, %v292_v32 }
  0xc0   :  { %v296_v38 = vclz %v295_v21 }
  0xc1   :  { %v158_v3 = vxor.u32 2147483648, %v157_v33 }
  0xc2   :  { %v409_v42 = vadd.s32 4294967294, %v296_v38 }
  0xc3   :  { %v159_v36 = vsel %vm38_vm8, %v158_v3, %v157_v33 }
  0xc4   :  { %v162_v40 = vsel %vm644_vm9, %v502_v6, %v159_v36  ;;  %vm410_vm10 = vcmp.lt.s32.totalorder %v409_v42, 0 }
  0xc5   :  { %v164_v41 = vmul.f32 %v162_v40, %v162_v40  ;;  %v299_v23 = vsel %vm410_vm10, 0, %v409_v42 }
  0xc6   :  { %v300_v48 = vsub.s32 32, %v299_v23  ;;  %v304_v49 = vsub.s32 4294967266, %v299_v23  ;;  %v301_v56 = vshll.u32 %v292_v32, %v299_v23  ;;  %v317_v32 = vsel %vm663_vm1, 0, %v315_v29 }
  0xc7   :  { %v165_v43 = vmul.f32 -0.001358992, %v164_v41  ;;  %v172_v44 = vmul.f32 -0.00019511016, %v164_v41  ;;  %v334_v34 = vand.u32 3, %v317_v32 }
  0xc8   :  { %v302_v54 = vshrl.u32 %v284_v47, %v300_v48  ;;  %v305_v57 = vadd.s32 127, %v304_v49 }
  0xc9   :  { %v166_v8 = vadd.f32 0.041655596, %v165_v43  ;;  %v173_v46 = vadd.f32 0.008332121, %v172_v44  ;;  %vm336_vm2 = vcmp.eq.s32.totalorder %v334_v34, 0  ;;  %vm339_vm3 = vcmp.eq.s32.totalorder %v334_v34, 2 }
  0xca   :  { %v303_v62 = vor.u32 %v302_v54, %v301_v56  ;;  %v306_v0 = vshll.u32 %v305_v57, 23  ;;  %vm335_vm4 = vcmp.lt.s32.totalorder %v334_v34, 2  ;;  %v427_v44 = vld [vmem:[%s690_s3] ss:$0 sm:$0xff] }
  0xcb   :  { %v167_v50 = vmul.f32 %v166_v8, %v164_v41  ;;  %v174_v53 = vmul.f32 %v173_v46, %v164_v41 }
  0xcc   :  { %v307_v4 = vor.u32 4788187, %v306_v0  ;;  %v310_v10 = vcvt.s32.f32 %v303_v62 }
  0xcd   :  { %v168_v58 = vadd.f32 -0.4999988, %v167_v50  ;;  %v175_v61 = vadd.f32 -0.16666654, %v174_v53 }
  0xce   :  { %v308_v9 = vand.u32 2147483647, %v307_v4 }
  0xcf   :  { %v169_v39 = vmul.f32 %v168_v58, %v164_v41  ;;  %v176_v2 = vmul.f32 %v175_v61, %v164_v41 }
  0xd0   :  { %v311_v37 = vmul.f32 %v310_v10, %v308_v9 }
  0xd1   :  { %v170_v1 = vadd.f32 1.0, %v169_v39  ;;  %v177_v5 = vadd.f32 1.0, %v176_v2 }
  0xd2   :  { %v312_v12 = vxor.u32 2147483648, %v311_v37 }
  0xd3   :  { %v178_v30 = vmul.f32 %v177_v5, %v162_v40  ;;  %v186_v60 = vxor.u32 2147483648, %v170_v1 }
  0xd4   :  { %v313_v14 = vsel %vm192_vm13, %v312_v12, %v311_v37 }
  0xd5   :  { %v183_v11 = vxor.u32 2147483648, %v178_v30  ;;  %v187_v17 = vsel %vm185_vm12, %v186_v60, %v178_v30  ;;  %v316_v18 = vsel %vm663_vm1, %v508_v15, %v313_v14 }
  0xd6   :  { %v318_v19 = vmul.f32 %v316_v18, %v316_v18 }
  0xd7   :  { %v184_v51 = vsel %vm182_vm11, %v170_v1, %v183_v11 }
  0xd8   :  { %v188_v63 = vsel %vm181_vm14, %v184_v51, %v187_v17  ;;  %v319_v20 = vmul.f32 -0.001358992, %v318_v19  ;;  %v326_v6 = vmul.f32 -0.00019511016, %v318_v19 }
  0xd9   :  { %v189_v16 = vsel %vm179_vm0, nan, %v188_v63 }
  0xda   :  { %412 = vmatmul.msk.f32.vlgmr.msra.gmra.mxu0 %vm349_vm15, %v189_v16  ;;  %v320_v59 = vadd.f32 0.041655596, %v319_v20  ;;  %v327_v24 = vadd.f32 0.008332121, %v326_v6 }
  0xdc   :  { %v321_v26 = vmul.f32 %v320_v59, %v318_v19  ;;  %v328_v28 = vmul.f32 %v327_v24, %v318_v19 }
  0xde   :  { %v322_v31 = vadd.f32 -0.4999988, %v321_v26  ;;  %v329_v52 = vadd.f32 -0.16666654, %v328_v28 }
  0xe0   :  { %v323_v33 = vmul.f32 %v322_v31, %v318_v19  ;;  %v330_v35 = vmul.f32 %v329_v52, %v318_v19 }
  0xe2   :  { %v324_v3 = vadd.f32 1.0, %v323_v33  ;;  %v331_v21 = vadd.f32 1.0, %v330_v35 }
  0xe4   :  { %v332_v36 = vmul.f32 %v331_v21, %v316_v18  ;;  %v340_v38 = vxor.u32 2147483648, %v324_v3 }
  0xe6   :  { %v337_v40 = vxor.u32 2147483648, %v332_v36  ;;  %v341_v42 = vsel %vm339_vm3, %v340_v38, %v332_v36 }
  0xe8   :  { %v338_v41 = vsel %vm336_vm2, %v324_v3, %v337_v40 }
  0xe9   :  { %v342_v27 = vsel %vm335_vm4, %v338_v41, %v341_v42 }
  0xea   :  { %v343_v43 = vsel %vm333_vm5, nan, %v342_v27 }
  0xeb   :  { %413 = vmatmul.msk.f32.vlgmr.msra.gmra.mxu1 %vm349_vm15, %v343_v43 }
 0x157   :  { %v377_v45 = vpop.f32.mrf.mxu0 }
 0x158   :  { %v378_v23 = vadd.f32 %v427_v44, %v377_v45 }
 0x15a   :  { %v383_v8 = vmax.f32 %v378_v23, 0.0 }
 0x15c   :  { %385 = vst [vmem:[#allocation2] sm:$0xff] %v383_v8 }
 0x168   :  { %v380_v46 = vpop.f32.mrf.mxu1 }
 0x169   :  { %v381_v15 = vadd.f32 %v427_v44, %v380_v46 }
 0x16b   :  { %v384_v47 = vmax.f32 %v381_v15, 0.0 }
 0x16d   :  { %386 = vst [vmem:[#allocation2 + $0x8] sm:$0xff] %v384_v47 }
 0x16e   :  { %399 = dma.vmem_to_hbm [thread:$0]  %s392_s23, 256, %s394_s26, [#allocation3], %s462_s27, %s462_s27, %s463_s28  }
 0x16f   :  { %452 = dma.done.wait [#allocation3], 256  }
 0x170   :  { %453 = vsyncadd [#allocation3], 4294967040 }
 0x171   :  { %404 = vsyncpa [#allocation3], 1 }

</bundles_post_ra>
